<compile_context>
chip_gen: v6e
topology: v6e:2x2x1
jax: 0.10.0
libtpu: 0.0.40
codegen_flags: <defaults>
</compile_context>

<pallas_src>
import jax
import jax.numpy as jnp
from jax.experimental import pallas as pl
from jax.experimental.pallas import tpu as pltpu

IN_DIM = 578   # fc1 input features (PyTorch spec)
HID = 128
OUT_DIM = 1


def critic_kernel(x_ref, w1_ref, b1_ref, w2_ref, b2_ref, w3_ref, b3_ref, o_ref):
    # x arrives as f32 (or bf16) straight from HBM; cast to bf16 on the VPU
    # (hidden under the input DMA).  W1/W2 are bf16; biases/fc3 row are f32.
    x = x_ref[...].astype(jnp.bfloat16)                               # (tile_b, 578)
    h = jnp.dot(x, w1_ref[...], preferred_element_type=jnp.float32)   # K=578, f32 acc
    h = jnp.maximum(h + b1_ref[...], 0.0)
    h = jnp.dot(h.astype(jnp.bfloat16), w2_ref[...],
                preferred_element_type=jnp.float32)
    h = jnp.maximum(h + b2_ref[...], 0.0)
    # fc3 has N=1: VPU multiply + per-row lane reduction instead of an N=1 MXU pass.
    o = jnp.sum(h * w3_ref[...], axis=-1, keepdims=True) + b3_ref[...]
    o_ref[...] = o.astype(o_ref.dtype)


def critic_forward(state, params, *, tile_b=None):
    """state: (B, 578) float32 (bf16 also accepted). Returns
    torch.squeeze(fc3(relu(fc2(relu(fc1(state))))), 0)."""
    w1, b1, w2, b2, w3_row, b3 = params  # prepared: see prepare_params()
    B = state.shape[0]

    # Tile the batch.  For small/medium B use a single full-extent block
    # (block dim == array dim is always layout-legal, even if B % 8 != 0).
    # For large B use 1024-row tiles; the ragged last tile is handled by
    # masked output stores -- no wrapper-side batch padding / copy.
    if tile_b is None:
        tile_b = B if B <= 1024 else 1024

    grid = (pl.cdiv(B, tile_b),)

    flops = 2 * B * (IN_DIM * HID + HID * HID + HID)
    bytes_accessed = (
        B * IN_DIM * state.dtype.itemsize            # input streamed as-is (no copies)
        + (w1.size + w2.size) * 2                    # bf16 weights
        + (b1.size + b2.size + w3_row.size + b3.size) * 4
        + B * OUT_DIM * 4                            # f32 output
    )

    out = pl.pallas_call(
        critic_kernel,
        out_shape=jax.ShapeDtypeStruct((B, OUT_DIM), jnp.float32),
        grid=grid,
        in_specs=[
            pl.BlockSpec((tile_b, IN_DIM), lambda i: (i, 0)),   # x: raw f32, tiled over batch
            pl.BlockSpec((IN_DIM, HID), lambda i: (0, 0)),      # W1 (bf16), VMEM-resident
            pl.BlockSpec((1, HID), lambda i: (0, 0)),           # b1
            pl.BlockSpec((HID, HID), lambda i: (0, 0)),         # W2 (bf16)
            pl.BlockSpec((1, HID), lambda i: (0, 0)),           # b2
            pl.BlockSpec((1, HID), lambda i: (0, 0)),           # W3 row (f32)
            pl.BlockSpec((1, OUT_DIM), lambda i: (0, 0)),       # b3
        ],
        out_specs=pl.BlockSpec((tile_b, OUT_DIM), lambda i: (i, 0)),
        compiler_params=pltpu.CompilerParams(
            dimension_semantics=("parallel",),       # megacore-shard batch on v7x
            vmem_limit_bytes=32 * 1024 * 1024,       # ~6 MiB needed; explicit for v5e
        ),
        cost_estimate=pl.CostEstimate(
            flops=flops, transcendentals=0, bytes_accessed=bytes_accessed),
    )(state, w1, b1, w2, b2, w3_row, b3)

    # torch.squeeze(x, 0): drop dim 0 only if it is size 1.
    if out.shape[0] == 1:
        out = jnp.squeeze(out, axis=0)
    return out


def init_params(key):
    """Deterministic init matching nn.Linear shapes (stored as (in, out)), f32."""
    ks = jax.random.split(key, 6)

    def uniform_linear(kw, kb, fan_in, fan_out):
        bound = 1.0 / jnp.sqrt(jnp.float32(fan_in))
        w = jax.random.uniform(kw, (fan_in, fan_out), jnp.float32, -bound, bound)
        b = jax.random.uniform(kb, (1, fan_out), jnp.float32, -bound, bound)
        return w, b

    w1, b1 = uniform_linear(ks[0], ks[1], IN_DIM, HID)
    w2, b2 = uniform_linear(ks[2], ks[3], HID, HID)
    w3, b3 = uniform_linear(ks[4], ks[5], HID, OUT_DIM)
    return (w1, b1, w2, b2, w3, b3)


def prepare_params(params):
    """One-time prep: cast MXU weights to bf16 (unpadded), fc3 as an f32 row."""
    w1, b1, w2, b2, w3, b3 = params
    return (
        w1.astype(jnp.bfloat16),            # (578, 128) bf16, no padding
        b1,                                 # (1, 128) f32
        w2.astype(jnp.bfloat16),            # (128, 128) bf16
        b2,                                 # (1, 128) f32
        w3.reshape(1, HID).astype(jnp.float32),   # fc3 stays f32 on the VPU
        b3.reshape(1, OUT_DIM),             # (1, 1) f32
    )


def _reference(state, params_f32):
    w1, b1, w2, b2, w3, b3 = params_f32
    ref = jnp.maximum(state @ w1 + b1, 0.0)
    ref = jnp.maximum(ref @ w2 + b2, 0.0)
    ref = ref @ w3 + b3
    if ref.shape[0] == 1:
        ref = jnp.squeeze(ref, axis=0)
    return ref


if __name__ == "__main__":
    key = jax.random.PRNGKey(0)
    kx, kp = jax.random.split(key)

    params_f32 = init_params(kp)
    params = prepare_params(params_f32)

    # Small batch; squeeze(0) is a no-op here, matching torch semantics.
    B = 2
    state = jax.random.normal(kx, (B, IN_DIM), dtype=jnp.float32)

    out = critic_forward(state, params)
    jax.block_until_ready(out)

    ref = _reference(state, params_f32)
    assert out.shape == ref.shape, (out.shape, ref.shape)
    # bf16 weights/activations with f32 accumulation -> ~1e-2 relative tolerance.
    assert jnp.allclose(out, ref, atol=2e-2, rtol=2e-2), \
        float(jnp.max(jnp.abs(out - ref)))

    # Also validate the torch.squeeze(out, 0) path (B == 1 drops dim 0).
    state1 = state[:1]
    out1 = critic_forward(state1, params)
    jax.block_until_ready(out1)
    ref1 = _reference(state1, params_f32)
    assert out1.shape == ref1.shape == (OUT_DIM,), (out1.shape, ref1.shape)
    assert jnp.allclose(out1, ref1, atol=2e-2, rtol=2e-2), \
        float(jnp.max(jnp.abs(out1 - ref1)))

    print("KERNEL_OK")
</pallas_src>

<mosaic_0001>
module attributes {stable_mosaic.version = 11 : i64} {
  func.func @critic_kernel(%arg0: i32, %arg1: memref<2x578xf32, #tpu.memory_space<vmem>>, %arg2: memref<578x128xbf16, #tpu.memory_space<vmem>>, %arg3: memref<1x128xf32, #tpu.memory_space<vmem>>, %arg4: memref<128x128xbf16, #tpu.memory_space<vmem>>, %arg5: memref<1x128xf32, #tpu.memory_space<vmem>>, %arg6: memref<1x128xf32, #tpu.memory_space<vmem>>, %arg7: memref<1x1xf32, #tpu.memory_space<vmem>>, %arg8: memref<2x1xf32, #tpu.memory_space<vmem>>) attributes {dimension_semantics = [#tpu.dimension_semantics<parallel>], iteration_bounds = array<i64: 1>, scalar_prefetch = 0 : i64, scratch_operands = 0 : i64, tpu.core_type = #tpu.core_type<tc>, window_params = [{transform_indices = @transform_0, window_bounds = array<i64: 2, 578>}, {pipeline_mode = #tpu.pipeline_mode<synchronous>, transform_indices = @transform_1, window_bounds = array<i64: 578, 128>}, {pipeline_mode = #tpu.pipeline_mode<synchronous>, transform_indices = @transform_2, window_bounds = array<i64: 1, 128>}, {pipeline_mode = #tpu.pipeline_mode<synchronous>, transform_indices = @transform_3, window_bounds = array<i64: 128, 128>}, {pipeline_mode = #tpu.pipeline_mode<synchronous>, transform_indices = @transform_4, window_bounds = array<i64: 1, 128>}, {pipeline_mode = #tpu.pipeline_mode<synchronous>, transform_indices = @transform_5, window_bounds = array<i64: 1, 128>}, {pipeline_mode = #tpu.pipeline_mode<synchronous>, transform_indices = @transform_6, window_bounds = array<i64: 1, 1>}, {transform_indices = @transform_7, window_bounds = array<i64: 2, 1>}]} {
    %c0 = arith.constant 0 : index
    %c0_0 = arith.constant 0 : index
    %0 = vector.load %arg1[%c0, %c0_0] : memref<2x578xf32, #tpu.memory_space<vmem>>, vector<2x578xf32>
    %1 = arith.truncf %0 : vector<2x578xf32> to vector<2x578xbf16>
    %c0_1 = arith.constant 0 : index
    %c0_2 = arith.constant 0 : index
    %2 = vector.load %arg2[%c0_1, %c0_2] : memref<578x128xbf16, #tpu.memory_space<vmem>>, vector<578x128xbf16>
    %cst = arith.constant dense<0.000000e+00> : vector<2x128xf32>
    %3 = tpu.matmul %1, %2, %cst {dimension_numbers = #tpu.dot_dimension_numbers<[1], [0], [0], [1], [0, 0, 1, 1], [], []>} : vector<2x578xbf16>, vector<578x128xbf16>, vector<2x128xf32> -> vector<2x128xf32>
    %c0_3 = arith.constant 0 : index
    %c0_4 = arith.constant 0 : index
    %4 = vector.load %arg3[%c0_3, %c0_4] : memref<1x128xf32, #tpu.memory_space<vmem>>, vector<1x128xf32>
    %5 = vector.broadcast %4 : vector<1x128xf32> to vector<2x128xf32>
    %6 = arith.addf %3, %5 : vector<2x128xf32>
    %cst_5 = arith.constant 0.000000e+00 : f32
    %7 = vector.broadcast %cst_5 : f32 to vector<2x128xf32>
    %8 = arith.maximumf %6, %7 : vector<2x128xf32>
    %9 = arith.truncf %8 : vector<2x128xf32> to vector<2x128xbf16>
    %c0_6 = arith.constant 0 : index
    %c0_7 = arith.constant 0 : index
    %10 = vector.load %arg4[%c0_6, %c0_7] : memref<128x128xbf16, #tpu.memory_space<vmem>>, vector<128x128xbf16>
    %cst_8 = arith.constant dense<0.000000e+00> : vector<2x128xf32>
    %11 = tpu.matmul %9, %10, %cst_8 {dimension_numbers = #tpu.dot_dimension_numbers<[1], [0], [0], [1], [0, 0, 1, 1], [], []>} : vector<2x128xbf16>, vector<128x128xbf16>, vector<2x128xf32> -> vector<2x128xf32>
    %c0_9 = arith.constant 0 : index
    %c0_10 = arith.constant 0 : index
    %12 = vector.load %arg5[%c0_9, %c0_10] : memref<1x128xf32, #tpu.memory_space<vmem>>, vector<1x128xf32>
    %13 = vector.broadcast %12 : vector<1x128xf32> to vector<2x128xf32>
    %14 = arith.addf %11, %13 : vector<2x128xf32>
    %cst_11 = arith.constant 0.000000e+00 : f32
    %15 = vector.broadcast %cst_11 : f32 to vector<2x128xf32>
    %16 = arith.maximumf %14, %15 : vector<2x128xf32>
    %c0_12 = arith.constant 0 : index
    %c0_13 = arith.constant 0 : index
    %17 = vector.load %arg6[%c0_12, %c0_13] : memref<1x128xf32, #tpu.memory_space<vmem>>, vector<1x128xf32>
    %18 = vector.broadcast %17 : vector<1x128xf32> to vector<2x128xf32>
    %19 = arith.mulf %16, %18 : vector<2x128xf32>
    %cst_14 = arith.constant dense<0.000000e+00> : vector<2xf32>
    %20 = vector.multi_reduction <add>, %19, %cst_14 [1] : vector<2x128xf32> to vector<2xf32>
    %21 = vector.shape_cast %20 : vector<2xf32> to vector<2x1xf32>
    %c0_15 = arith.constant 0 : index
    %c0_16 = arith.constant 0 : index
    %22 = vector.load %arg7[%c0_15, %c0_16] : memref<1x1xf32, #tpu.memory_space<vmem>>, vector<1x1xf32>
    %23 = vector.broadcast %22 : vector<1x1xf32> to vector<2x1xf32>
    %24 = arith.addf %21, %23 : vector<2x1xf32>
    %c0_17 = arith.constant 0 : index
    %c0_18 = arith.constant 0 : index
    %25 = vector.load %arg8[%c0_17, %c0_18] : memref<2x1xf32, #tpu.memory_space<vmem>>, vector<2x1xf32>
    tpu.vector_store %arg8[%c0_17, %c0_18], %24 {strides = array<i32>} : memref<2x1xf32, #tpu.memory_space<vmem>>, vector<2x1xf32>,
    return
  }
  func.func @transform_0(%arg0: i32) -> (i32, i32) {
    %c0_i32 = arith.constant 0 : i32
    %c0_i32_0 = arith.constant 0 : i32
    return %arg0, %c0_i32 : i32, i32
  }
  func.func @transform_1(%arg0: i32) -> (i32, i32) {
    %c0_i32 = arith.constant 0 : i32
    %c0_i32_0 = arith.constant 0 : i32
    %c0_i32_1 = arith.constant 0 : i32
    return %c0_i32, %c0_i32_0 : i32, i32
  }
  func.func @transform_2(%arg0: i32) -> (i32, i32) {
    %c0_i32 = arith.constant 0 : i32
    %c0_i32_0 = arith.constant 0 : i32
    %c0_i32_1 = arith.constant 0 : i32
    return %c0_i32, %c0_i32_0 : i32, i32
  }
  func.func @transform_3(%arg0: i32) -> (i32, i32) {
    %c0_i32 = arith.constant 0 : i32
    %c0_i32_0 = arith.constant 0 : i32
    %c0_i32_1 = arith.constant 0 : i32
    return %c0_i32, %c0_i32_0 : i32, i32
  }
  func.func @transform_4(%arg0: i32) -> (i32, i32) {
    %c0_i32 = arith.constant 0 : i32
    %c0_i32_0 = arith.constant 0 : i32
    %c0_i32_1 = arith.constant 0 : i32
    return %c0_i32, %c0_i32_0 : i32, i32
  }
  func.func @transform_5(%arg0: i32) -> (i32, i32) {
    %c0_i32 = arith.constant 0 : i32
    %c0_i32_0 = arith.constant 0 : i32
    %c0_i32_1 = arith.constant 0 : i32
    return %c0_i32, %c0_i32_0 : i32, i32
  }
  func.func @transform_6(%arg0: i32) -> (i32, i32) {
    %c0_i32 = arith.constant 0 : i32
    %c0_i32_0 = arith.constant 0 : i32
    %c0_i32_1 = arith.constant 0 : i32
    return %c0_i32, %c0_i32_0 : i32, i32
  }
  func.func @transform_7(%arg0: i32) -> (i32, i32) {
    %c0_i32 = arith.constant 0 : i32
    %c0_i32_0 = arith.constant 0 : i32
    return %arg0, %c0_i32 : i32, i32
  }
}

</mosaic_0001>

<bundles_post_ra>
// kernel: tpu_custom_call.1
= control target key start
LH: loop header
LB: loop body
LE: loop exit
PB: predicated region body
PF: predicated region fallthrough
CT: control target
= control target key end

     0   :  { %s1009_s0 = inlined_call_operand.hbm [shape: f32[2,578], index: 0, kind: input, shape index: {}]   ;;  %s1010_s1 = inlined_call_operand.hbm [shape: bf16[578,128], index: 1, kind: input, shape index: {}]   ;;  %s1011_s2 = inlined_call_operand.vmem [shape: f32[1,128], index: 2, kind: input, shape index: {}]   ;;  %s1012_s3 = inlined_call_operand.hbm [shape: bf16[128,128], index: 3, kind: input, shape index: {}]   ;;  %s1013_s4 = inlined_call_operand.vmem [shape: f32[1,128], index: 4, kind: input, shape index: {}]   ;;  %s1014_s5 = inlined_call_operand.vmem [shape: f32[1,128], index: 5, kind: input, shape index: {}]   ;;  %s1015_s6 = inlined_call_operand.<no memory space> [shape: f32[1,1], index: 6, kind: input, shape index: {}]   ;;  %s1016_s7 = inlined_call_operand.vmem [shape: f32[2,1], index: 7, kind: output, shape index: {}]  }
   0x1   :  { %v12_v0 = vstv %s1015_s6 }
   0x2   :  { %13 = vst [vmem:[#allocation2] sm:$0x1] %v12_v0 }
   0x3   :  { %14 = vsyncpa [#allocation4], 0 }
   0x4   :  { %15 = vsyncpa [#allocation6], 0  ;;  %s937_s26 = smov [#allocation5]  }
   0x5   :  { %s31_s27 = sshll.u32 %s937_s26, 4  ;;  %s32_s27 = int_to_ptr.vmem [resolvable:$true] %s31_s27 }
   0x6   :  { %s881_s28 = scalar_lea.vmem %s32_s27, 4672  ;;  %p886_p1 = scmp.lt.s32.totalorder %s32_s27, %s32_s27 }
   0x7   :  { %p882_p0 = scmp.ne.s32.totalorder %s32_s27, %s881_s28  ;;  %p887_p2 = scmp.lt.s32.totalorder %s881_s28, %s881_s28 }
   0x9   :  { %p888_p3 = por %p887_p2, %p886_p1 }
   0xb   :  { %p889_p4 = pnand %p888_p3, %p882_p0 }
   0xd   :  { %892 = shalt.err (!%p889_p4)
}
   0xe   :  { %s938_s29 = smov 64   ;;  %s939_s30 = smov 4  }
   0xf   :  { %37 = dma.hbm_to_vmem [thread:$0]  %s1010_s1, 4672, %s32_s27, [#allocation6], %s938_s29, %s938_s29, %s939_s30  }
  0x10   :  { %s940_s6 = smov [#allocation3]   ;;  %s941_s11 = smov [#allocation7]  }
  0x11   :  { %s22_s10 = sshll.u32 %s940_s6, 4  ;;  %s45_s12 = sshll.u32 %s941_s11, 4  ;;  %s23_s10 = int_to_ptr.vmem [resolvable:$true] %s22_s10  ;;  %s46_s12 = int_to_ptr.vmem [resolvable:$true] %s45_s12 }
  0x12   :  { %s901_s13 = scalar_lea.vmem %s23_s10, 160  ;;  %p906_p6 = scmp.lt.s32.totalorder %s23_s10, %s23_s10 }
  0x13   :  { %p902_p5 = scmp.ne.s32.totalorder %s23_s10, %s901_s13  ;;  %p907_p7 = scmp.lt.s32.totalorder %s901_s13, %s901_s13 }
  0x15   :  { %p908_p8 = por %p907_p7, %p906_p6 }
  0x17   :  { %p909_p9 = pnand %p908_p8, %p902_p5 }
  0x19   :  { %912 = shalt.err (!%p909_p9)
}
  0x1a   :  { %25 = dma.hbm_to_vmem [thread:$0]  %s1009_s0, 160, %s23_s10, [#allocation4]  }
  0x1b   :  { %s921_s16 = scalar_lea.vmem %s46_s12, 1024  ;;  %p926_p11 = scmp.lt.s32.totalorder %s46_s12, %s46_s12 }
  0x1c   :  { %p922_p10 = scmp.ne.s32.totalorder %s46_s12, %s921_s16  ;;  %p927_p12 = scmp.lt.s32.totalorder %s921_s16, %s921_s16 }
  0x1e   :  { %p928_p13 = por %p927_p12, %p926_p11 }
  0x20   :  { %p929_p0 = pnand %p928_p13, %p922_p10 }
  0x22   :  { %932 = shalt.err (!%p929_p0)
}
  0x23   :  { %51 = dma.hbm_to_vmem [thread:$0]  %s1012_s3, 1024, %s46_s12, [#allocation6], %s938_s29, %s938_s29, %s939_s30  }
  0x24   :  { %933 = dma.done.wait [#allocation4], 160  }
  0x25   :  { %934 = vsyncadd [#allocation4], 4294967136 }
  0x26   :  { %935 = dma.done.wait [#allocation6], 5696  }
  0x27   :  { %936 = vsyncadd [#allocation6], 4294961600  ;;  %v827_v1 = vld [vmem:[#allocation5 + $0x78] sm:$0xff]   ;;  %v831_v5 = vld [vmem:[#allocation5 + $0x70] sm:$0xff]   ;;  %v942_v22 = vmov 1983009808   ;;  %v76_v24 = vlaneseq }
  0x28   :  { %v828_v2 = vld [vmem:[#allocation5 + $0x38] sm:$0xff]   ;;  %726 = vmatprep.subr.bf16.mxu0 %v827_v1  ;;  %v832_v6 = vld [vmem:[#allocation5 + $0x30] sm:$0xff]   ;;  %v835_v9 = vld [vmem:[#allocation5 + $0x68] sm:$0xff]   ;;  %v74_v23 = vunpack.c.l.s4 %v942_v22  ;;  %v943_v41 = vmov 0.0   ;;  %vm409_vm0 = vcmask 1040384   ;;  %vm944_vm1 = vmmov 0  }
  0x29   :  { %v829_v3 = vld [vmem:[#allocation5 + $0xf8] sm:$0xff]   ;;  %727 = vmatpush3.bf16.msra.mxu0 %v828_v2  ;;  %v833_v7 = vld [vmem:[#allocation5 + $0xf0] sm:$0xff]   ;;  %v836_v10 = vld [vmem:[#allocation5 + $0x28] sm:$0xff]   ;;  %v77_v30 = vshrl.u32 %v76_v24, 7  ;;  %vm405_vm2 = vcmask 539648   ;;  %vm655_vm3 = vcmask 1041408  }
  0x2a   :  { %v830_v4 = vld [vmem:[#allocation5 + $0xb8] sm:$0xff]   ;;  %748 = vmatprep.subr.bf16.mxu1 %v829_v3  ;;  %728 = vmatprep.subr.bf16.mxu0 %v831_v5  ;;  %v834_v8 = vld [vmem:[#allocation5 + $0xb0] sm:$0xff]   ;;  %v837_v11 = vld [vmem:[#allocation5 + $0xe8] sm:$0xff]   ;;  %v75_v29 = vunpack.c.0.s8 %v74_v23  ;;  %vm667_vm4 = vcmask 1024  }
  0x2b   :  { %749 = vmatpush3.bf16.msra.mxu1 %v830_v4  ;;  %v838_v12 = vld [vmem:[#allocation5 + $0xa8] sm:$0xff]   ;;  %v839_v13 = vld [vmem:[#allocation5 + $0x60] sm:$0xff]   ;;  %v843_v17 = vld [vmem:[#allocation5 + $0x58] sm:$0xff]  }
  0x2c   :  { %750 = vmatprep.subr.bf16.mxu1 %v833_v7  ;;  %v840_v14 = vld [vmem:[#allocation5 + $0x20] sm:$0xff]   ;;  %v844_v18 = vld [vmem:[#allocation5 + $0x18] sm:$0xff]   ;;  %v847_v21 = vld [vmem:[#allocation5 + $0x50] sm:$0xff]   ;;  %v78_v35 = vsub.s32 %v75_v29, %v77_v30 }
  0x2d   :  { %729 = vmatpush3.bf16.msra.mxu0 %v832_v6  ;;  %v841_v15 = vld [vmem:[#allocation5 + $0xe0] sm:$0xff]   ;;  %v845_v19 = vld [vmem:[#allocation5 + $0xd8] sm:$0xff]   ;;  %v848_v25 = vld [vmem:[#allocation5 + $0x10] sm:$0xff]  }
  0x2e   :  { %730 = vmatprep.subr.bf16.mxu0 %v835_v9  ;;  %v842_v16 = vld [vmem:[#allocation5 + $0xa0] sm:$0xff]   ;;  %v846_v20 = vld [vmem:[#allocation5 + $0x98] sm:$0xff]   ;;  %v849_v26 = vld [vmem:[#allocation5 + $0xd0] sm:$0xff]  }
  0x2f   :  { %751 = vmatpush3.bf16.msra.mxu1 %v834_v8  ;;  %v850_v27 = vld [vmem:[#allocation5 + $0x90] sm:$0xff]   ;;  %v851_v28 = vld [vmem:[#allocation5 + $0x48] sm:$0xff]   ;;  %v855_v34 = vld [vmem:[#allocation5 + $0x40] sm:$0xff]  }
  0x30   :  { %752 = vmatprep.subr.bf16.mxu1 %v837_v11  ;;  %v852_v31 = vld [vmem:[#allocation5 + $0x8] sm:$0xff]   ;;  %v856_v36 = vld [vmem:[#allocation5] sm:$0xff]   ;;  %v68_v38 = vld [vmem:[#allocation3] sm:$0xff] }
  0x31   :  { %731 = vmatpush3.bf16.msra.mxu0 %v836_v10  ;;  %v853_v32 = vld [vmem:[#allocation5 + $0xc8] sm:$0xff]   ;;  %v857_v37 = vld [vmem:[#allocation5 + $0xc0] sm:$0xff]   ;;  %v79_v39 = vrot.slane %v68_v38, %v78_v35  ;;  %v72_v42 = vcombine.high %v68_v38, %v68_v38  ;;  %v861_v52 = vld [vmem:[#allocation5 + $0x118] sm:$0xff]  }
  0x32   :  { %732 = vmatprep.subr.bf16.mxu0 %v839_v13  ;;  %v854_v33 = vld [vmem:[#allocation5 + $0x88] sm:$0xff]   ;;  %v858_v40 = vld [vmem:[#allocation5 + $0x80] sm:$0xff]   ;;  %v862_v54 = vld [vmem:[#allocation5 + $0x110] sm:$0xff]  }
  0x33   :  { %753 = vmatpush3.bf16.msra.mxu1 %v838_v12  ;;  %v860_v43 = vld [vmem:[#allocation5 + $0x120] ss:$0 sps:$4 sm:$0x11]   ;;  %v87_v44 = vcombine.high %v79_v39, %v79_v39  ;;  %v86_v45 = vrot.slane %v72_v42, %v78_v35  ;;  %v101_v46 = vpack.c.bf16 %v79_v39, %v79_v39  ;;  %v863_v55 = vld [vmem:[#allocation5 + $0x108] sm:$0xff]   ;;  %v866_v59 = vld [vmem:[#allocation7 + $0x30] sm:$0xff]  }
  0x34   :  { %754 = vmatprep.subr.bf16.mxu1 %v841_v15  ;;  %v411_v49 = vsel %vm409_vm0, %v860_v43, 0  ;;  %v865_v53 = vld [vmem:[#allocation7 + $0x38] sm:$0xff]   ;;  %v867_v60 = vld [vmem:[#allocation7 + $0x28] sm:$0xff]   ;;  %v868_v61 = vld [vmem:[#allocation7 + $0x20] sm:$0xff]  }
  0x35   :  { %733 = vmatpush3.bf16.msra.mxu0 %v840_v14  ;;  %v102_v47 = vpack.c.bf16 %v87_v44, %v87_v44  ;;  %v88_v48 = vcombine.high %v86_v45, %v86_v45  ;;  %v103_v50 = vpack.c.bf16 %v86_v45, %v86_v45  ;;  %v864_v56 = vld [vmem:[#allocation5 + $0x100] sm:$0xff]   ;;  %v675_v57 = vld.sshfl [vmem:[#allocation3 + $0x8] sm:$0x3 pattern:$0x76325410]  ;;  %v870_v63 = vld [vmem:[#allocation7 + $0x10] sm:$0xff]  }
  0x36   :  { %734 = vmatprep.subr.bf16.mxu0 %v843_v17  ;;  %v105_v58 = vpack.c.bf16 %v675_v57, %v675_v57  ;;  %v869_v62 = vld [vmem:[#allocation7 + $0x18] sm:$0xff]   ;;  %v871_v0 = vld [vmem:[#allocation7 + $0x8] sm:$0xff]   ;;  %v872_v1 = vld [vmem:[#allocation7] sm:$0xff]  }
  0x37   :  { %755 = vmatpush3.bf16.msra.mxu1 %v842_v16  ;;  %445 = vmatprep.mubr.bf16.mxu0 %v102_v47  ;;  %v104_v51 = vpack.c.bf16 %v88_v48, %v88_v48  ;;  %v676_v11 = vld [vmem:[%s1011_s2] ss:$0 sm:$0xff] }
  0x38   :  { %756 = vmatprep.subr.bf16.mxu1 %v845_v19  ;;  %v715_v22 = vld [vmem:[%s1013_s4] ss:$0 sm:$0xff] }
  0x39   :  { %735 = vmatpush3.bf16.msra.mxu0 %v844_v18  ;;  %485 = vmatprep.mubr.bf16.mxu1 %v104_v51 }
  0x3a   :  { %736 = vmatprep.subr.bf16.mxu0 %v847_v21 }
  0x3b   :  { %757 = vmatpush3.bf16.msra.mxu1 %v846_v20 }
  0x3c   :  { %758 = vmatprep.subr.bf16.mxu1 %v849_v26  ;;  %v724_v26 = vld [vmem:[%s1014_s5] ss:$0 sm:$0xff] }
  0x3d   :  { %737 = vmatpush3.bf16.msra.mxu0 %v848_v25 }
  0x3e   :  { %738 = vmatprep.subr.bf16.mxu0 %v851_v28 }
  0x3f   :  { %759 = vmatpush3.bf16.msra.mxu1 %v850_v27 }
  0x40   :  { %760 = vmatprep.subr.bf16.mxu1 %v853_v32  ;;  %v725_v32 = vld [vmem:[#allocation2] ss:$0 sm:$0xff] }
  0x41   :  { %739 = vmatpush3.bf16.msra.mxu0 %v852_v31 }
  0x42   :  { %740 = vmatprep.subr.bf16.mxu0 %v855_v34 }
  0x43   :  { %761 = vmatpush3.bf16.msra.mxu1 %v854_v33 }
  0x44   :  { %762 = vmatprep.subr.bf16.mxu1 %v857_v37 }
  0x45   :  { %741 = vmatpush3.bf16.msra.mxu0 %v856_v36 }
  0x46   :  { %785 = vmatprep.subr.bf16.mxu0 %v943_v41 }
  0x47   :  { %763 = vmatpush3.bf16.msra.mxu1 %v858_v40 }
  0x48   :  { %799 = vmatprep.subr.bf16.mxu1 %v943_v41  ;;  %446 = vmatmul.mubr.bf16.vlgmr.msra.gmra.mxu0 %v101_v46 }
  0x49   :  { %786 = vmatpush3.bf16.msra.mxu0 %v411_v49  ;;  %795 = vmatprep.mubr.msk.bf16.mxu0 %vm944_vm1, %v943_v41 }
  0x4a   :  { %486 = vmatmul.mubr.bf16.vlgmr.msra.gmra.mxu1 %v103_v50  ;;  %787 = vmatprep.subr.bf16.mxu0 %v943_v41 }
  0x4b   :  { %800 = vmatpush3.bf16.msra.mxu1 %v865_v53  ;;  %815 = vmatprep.mubr.msk.bf16.mxu1 %vm944_vm1, %v943_v41 }
  0x4c   :  { %801 = vmatprep.subr.bf16.mxu1 %v943_v41 }
  0x4d   :  { %788 = vmatpush3.bf16.msra.mxu0 %v861_v52 }
  0x4e   :  { %789 = vmatprep.subr.bf16.mxu0 %v943_v41 }
  0x4f   :  { %802 = vmatpush3.bf16.msra.mxu1 %v866_v59 }
  0x50   :  { %803 = vmatprep.subr.bf16.mxu1 %v943_v41 }
  0x51   :  { %790 = vmatpush3.bf16.msra.mxu0 %v862_v54 }
  0x52   :  { %791 = vmatprep.subr.bf16.mxu0 %v943_v41 }
  0x53   :  { %804 = vmatpush3.bf16.msra.mxu1 %v867_v60 }
  0x54   :  { %805 = vmatprep.subr.bf16.mxu1 %v943_v41 }
  0x55   :  { %792 = vmatpush3.bf16.msra.mxu0 %v863_v55 }
  0x56   :  { %793 = vmatprep.subr.bf16.mxu0 %v943_v41 }
  0x57   :  { %806 = vmatpush3.bf16.msra.mxu1 %v868_v61 }
  0x58   :  { %807 = vmatprep.subr.bf16.mxu1 %v943_v41 }
  0x59   :  { %794 = vmatpush3.bf16.msra.mxu0 %v864_v56 }
  0x5b   :  { %808 = vmatpush3.bf16.msra.mxu1 %v869_v62 }
  0x5c   :  { %796 = vmatmul.mubr.msk.bf16.vlgmr.msra.gmra.mxu0 %vm405_vm2, %v105_v58  ;;  %809 = vmatprep.subr.bf16.mxu1 %v943_v41 }
  0x5f   :  { %810 = vmatpush3.bf16.msra.mxu1 %v870_v63 }
  0x60   :  { %811 = vmatprep.subr.bf16.mxu1 %v943_v41 }
  0x63   :  { %812 = vmatpush3.bf16.msra.mxu1 %v871_v0 }
  0x64   :  { %813 = vmatprep.subr.bf16.mxu1 %v943_v41 }
  0x67   :  { %814 = vmatpush3.bf16.msra.mxu1 %v872_v1 }
 0x108   :  { %v742_v2 = vpop.f32.mrf.mxu0 }
 0x10a   :  { %v743_v3 = vpop.f32.mrf.mxu0  ;;  %v764_v4 = vpop.f32.mrf.mxu1 }
 0x10b   :  { %v744_v10 = vadd.f32 %v743_v3, %v742_v2 }
 0x10c   :  { %v745_v5 = vpop.f32.mrf.mxu0  ;;  %v765_v6 = vpop.f32.mrf.mxu1 }
 0x10d   :  { %v448_v12 = vadd.f32 %v744_v10, %v676_v11  ;;  %v766_v13 = vadd.f32 %v765_v6, %v764_v4 }
 0x10e   :  { %v746_v7 = vpop.f32.mrf.mxu0  ;;  %v767_v8 = vpop.f32.mrf.mxu1 }
 0x10f   :  { %v488_v14 = vadd.f32 %v766_v13, %v448_v12 }
 0x110   :  { %v768_v9 = vpop.f32.mrf.mxu1 }
 0x11c   :  { %v527_v15 = vpop.f32.mrf.mxu0 }
 0x11d   :  { %v528_v16 = vadd.f32 %v527_v15, %v488_v14 }
 0x11e   :  { %v797_v17 = vpop.f32.mrf.mxu0 }
 0x11f   :  { %v533_v18 = vmax.f32 %v528_v16, 0.0 }
 0x120   :  { %v530_v19 = vpop.f32.mrf.mxu0 }
 0x121   :  { %v534_v20 = vpack.c.bf16 %v533_v18, %v533_v18 }
 0x122   :  { %v798_v21 = vpop.f32.mrf.mxu0 }
 0x123   :  { %816 = vmatmul.mubr.bf16.vlgmr.msra.gmra.mxu1 %v534_v20 }
 0x1e3   :  { %v640_v23 = vpop.f32.mrf.mxu1 }
 0x1e4   :  { %v641_v24 = vadd.f32 %v715_v22, %v640_v23 }
 0x1e5   :  { %v817_v25 = vpop.f32.mrf.mxu1 }
 0x1e6   :  { %v646_v27 = vmax.f32 %v641_v24, 0.0 }
 0x1e7   :  { %v643_v28 = vpop.f32.mrf.mxu1 }
 0x1e8   :  { %v654_v29 = vmul.f32 %v724_v26, %v646_v27 }
 0x1e9   :  { %v818_v30 = vpop.f32.mrf.mxu1 }
 0x1ea   :  { %v656_v31 = vsel %vm655_vm3, %v654_v29, 0.0 }
 0x1eb   :  { %657 = vadd.xlane.f32.xlu0 %v656_v31 }
 0x274   :  { %v658_v33 = vpop.xlane.xlu0 %657 }
 0x275   :  { %v666_v34 = vadd.f32 %v725_v32, %v658_v33 }
 0x277   :  { %668 = vst.msk [vmem:[%s1016_s7] sm:$0x3] %vm667_vm4, %v666_v34 }
 0x278   :  { %673 = vsyncpa [#allocation4], 1 }
 0x279   :  { %674 = vsyncpa [#allocation6], 1 }

</bundles_post_ra>
